<compile_context>
chip_gen: v6e
topology: v6e:2x2x1
jax: 0.10.0
libtpu: 0.0.40
codegen_flags: <defaults>
</compile_context>

<pallas_src>
import math
import numpy as np
import jax
import jax.numpy as jnp
from jax import lax
from jax.experimental import pallas as pl
from jax.experimental.pallas import tpu as pltpu

# ---------------- model config (small, consistent with the module) ----------------
B = 2          # batch
S = 8          # sequence length
D = 32         # d_model
H = 4          # nheads
DH = D // H    # head dim
F = 64         # dim_feedforward
EPS = 1e-6     # LayerNormalization eps (matches the module's eps=1e-06)

W_COLS = 3 * D            # weight-slab column width (96)
W_ROWS = 3 * D + F        # weight-slab rows (wqkv 32 + wo 32 + w1 32 + w2 64 = 160)
V_ROWS, V_COLS = 8, 128   # vector-slab shape (one (8,128)-aligned tile)


# ---------------------------------- kernel ----------------------------------------
def _layernorm(y, gamma, beta):
    mu = jnp.mean(y, axis=-1, keepdims=True)
    var = jnp.mean(jnp.square(y - mu), axis=-1, keepdims=True)
    # rsqrt goes to the EUP slot; exact enough for 1e-3 parity with /sqrt.
    return (y - mu) * lax.rsqrt(var + EPS) * gamma + beta


def encoder_block_kernel(x_ref, w_ref, v_ref, o_ref):
    x = x_ref[...]                                    # (B*S, D), whole batch at once

    # --- static slices out of the two packed slabs (sublane offsets are 8-aligned) ---
    wqkv = w_ref[0:D, 0:3 * D]                        # (D, 3D) per-head [Qh|Kh|Vh], scale folded
    wo   = w_ref[D:2 * D, 0:D]                        # (D, D)
    w1   = w_ref[2 * D:3 * D, 0:F]                    # (D, F)
    w2   = w_ref[3 * D:3 * D + F, 0:D]                # (F, D)

    vecs = v_ref[...]                                 # (8, 128)
    bqkv = vecs[0:1, 0:3 * D]
    bo   = vecs[1:2, 0:D]
    g1   = vecs[2:3, 0:D]
    be1  = vecs[3:4, 0:D]
    bf1  = vecs[4:5, 0:F]
    bf2  = vecs[5:6, 0:D]
    g2   = vecs[6:7, 0:D]
    be2  = vecs[7:8, 0:D]

    # --- fused QKV projection: one MXU matmul + one bias broadcast ---
    qkv = jnp.dot(x, wqkv, preferred_element_type=jnp.float32) + bqkv   # (B*S, 3D)

    # --- attention: independent (b, h) computations, assembled without VMEM scratch ---
    rows = []
    for b in range(B):
        r0 = b * S
        heads = []
        for h in range(H):
            c = 3 * DH * h
            chunk = qkv[r0:r0 + S, c:c + 3 * DH]      # (S, 3*DH) one contiguous slice
            qh = chunk[:, 0:DH]                       # already scaled by 1/sqrt(DH)
            kh = chunk[:, DH:2 * DH]
            vh = chunk[:, 2 * DH:3 * DH]
            # q @ k^T without an explicit transpose (contract last dims on the MXU).
            s = lax.dot_general(qh, kh, (((1,), (1,)), ((), ())),
                                preferred_element_type=jnp.float32)     # (S, S)
            m = jnp.max(s, axis=-1, keepdims=True)
            p = jnp.exp(s - m)
            p = p / jnp.sum(p, axis=-1, keepdims=True)   # exact divide (correctness)
            heads.append(jnp.dot(p, vh, preferred_element_type=jnp.float32))
        rows.append(jnp.concatenate(heads, axis=1))   # (S, D)
    attn = jnp.concatenate(rows, axis=0)              # (B*S, D), stays in vregs

    # --- single output projection over the whole (B*S, D) slab ---
    attn = jnp.dot(attn, wo, preferred_element_type=jnp.float32) + bo

    # --- residual + LayerNorm 1 (post-norm) ---
    x1 = _layernorm(x + attn, g1, be1)

    # --- feed forward (dropout = identity in eval) ---
    h1 = jnp.maximum(jnp.dot(x1, w1, preferred_element_type=jnp.float32) + bf1, 0.0)
    ff = jnp.dot(h1, w2, preferred_element_type=jnp.float32) + bf2

    # --- residual + LayerNorm 2 ---
    o_ref[...] = _layernorm(x1 + ff, g2, be2)


# ------------------------- one-time parameter packing -------------------------------
def pack_params(p):
    """Run ONCE (hoisted out of the forward path). Builds the two packed operands."""
    scale = 1.0 / math.sqrt(DH)
    wq_s = p["wq"] * scale                            # fold softmax scale into Q proj
    bq_s = p["bq"] * scale

    # per-head contiguous column layout: [Q_h | K_h | V_h] for h = 0..H-1
    wcols, bcols = [], []
    for h in range(H):
        sl = slice(h * DH, (h + 1) * DH)
        wcols += [wq_s[:, sl], p["wk"][:, sl], p["wv"][:, sl]]
        bcols += [bq_s[:, sl], p["bk"][:, sl], p["bv"][:, sl]]
    wqkv = jnp.concatenate(wcols, axis=1)             # (D, 3D)
    bqkv = jnp.concatenate(bcols, axis=1)             # (1, 3D)

    def padc(w, width):
        return jnp.pad(w, ((0, 0), (0, width - w.shape[1])))

    # weight slab: rows [wqkv | wo | w1 | w2], columns padded to 3D
    w_slab = jnp.concatenate(
        [padc(wqkv, W_COLS), padc(p["wo"], W_COLS),
         padc(p["w1"], W_COLS), padc(p["w2"], W_COLS)], axis=0)   # (160, 96)

    # vector slab: one padded (8, 128) tile, one vector per row
    v_slab = jnp.concatenate(
        [padc(bqkv, V_COLS), padc(p["bo"], V_COLS), padc(p["g1"], V_COLS),
         padc(p["be1"], V_COLS), padc(p["bf1"], V_COLS), padc(p["bf2"], V_COLS),
         padc(p["g2"], V_COLS), padc(p["be2"], V_COLS)], axis=0)  # (8, 128)

    return w_slab.astype(jnp.float32), v_slab.astype(jnp.float32)


# --------------------------------- wrapper -----------------------------------------
@jax.jit
def encoder_block(x, w_slab, v_slab):
    Bx, Sx, Dx = x.shape
    x_flat = x.reshape(Bx * Sx, Dx)                   # flat rows; reshape outside kernel

    vmem = pltpu.MemorySpace.VMEM
    out = pl.pallas_call(
        encoder_block_kernel,
        out_shape=jax.ShapeDtypeStruct((Bx * Sx, Dx), jnp.float32),
        # single invocation (no grid): whole problem resident in VMEM, no pipelining overhead
        in_specs=[pl.BlockSpec(memory_space=vmem)] * 3,
        out_specs=pl.BlockSpec(memory_space=vmem),
    )(x_flat, w_slab, v_slab)
    return out.reshape(Bx, Sx, Dx)


# ---------------------------- pure-JAX reference ------------------------------------
def encoder_block_ref(x, p):
    def ln(y, g, b):
        mu = y.mean(-1, keepdims=True)
        var = ((y - mu) ** 2).mean(-1, keepdims=True)
        return (y - mu) / jnp.sqrt(var + EPS) * g + b

    q = x @ p["wq"] + p["bq"]
    k = x @ p["wk"] + p["bk"]
    v = x @ p["wv"] + p["bv"]
    qh = q.reshape(B, S, H, DH).transpose(0, 2, 1, 3)
    kh = k.reshape(B, S, H, DH).transpose(0, 2, 1, 3)
    vh = v.reshape(B, S, H, DH).transpose(0, 2, 1, 3)
    scores = jnp.einsum("bhqd,bhkd->bhqk", qh, kh) / math.sqrt(DH)
    attn = jax.nn.softmax(scores, axis=-1)
    out = jnp.einsum("bhqk,bhkd->bhqd", attn, vh).transpose(0, 2, 1, 3).reshape(B, S, D)
    out = out @ p["wo"] + p["bo"]
    x1 = ln(x + out, p["g1"], p["be1"])
    ff = jnp.maximum(x1 @ p["w1"] + p["bf1"], 0.0) @ p["w2"] + p["bf2"]
    return ln(x1 + ff, p["g2"], p["be2"])


# ------------------------------------ main ------------------------------------------
if __name__ == "__main__":
    key = jax.random.PRNGKey(0)
    ks = jax.random.split(key, 16)

    def rnd(k, shape, scale):
        return jax.random.normal(k, shape, dtype=jnp.float32) * scale

    params = {
        # attention in-proj (stored pre-transposed: y = x @ W + b)
        "wq": rnd(ks[0], (D, D), 1.0 / math.sqrt(D)),
        "wk": rnd(ks[1], (D, D), 1.0 / math.sqrt(D)),
        "wv": rnd(ks[2], (D, D), 1.0 / math.sqrt(D)),
        "bq": rnd(ks[3], (1, D), 0.02),
        "bk": rnd(ks[4], (1, D), 0.02),
        "bv": rnd(ks[5], (1, D), 0.02),
        # attention out-proj
        "wo": rnd(ks[6], (D, D), 1.0 / math.sqrt(D)),
        "bo": rnd(ks[7], (1, D), 0.02),
        # LayerNorm 1
        "g1": jnp.ones((1, D), jnp.float32),
        "be1": jnp.zeros((1, D), jnp.float32),
        # feed forward
        "w1": rnd(ks[8], (D, F), 1.0 / math.sqrt(D)),
        "bf1": rnd(ks[9], (1, F), 0.02),
        "w2": rnd(ks[10], (F, D), 1.0 / math.sqrt(F)),
        "bf2": rnd(ks[11], (1, D), 0.02),
        # LayerNorm 2
        "g2": jnp.ones((1, D), jnp.float32),
        "be2": jnp.zeros((1, D), jnp.float32),
    }

    x = jax.random.normal(ks[12], (B, S, D), dtype=jnp.float32)

    # pack once (hoisted off the per-forward path)
    w_slab, v_slab = pack_params(params)
    w_slab, v_slab = jax.block_until_ready((w_slab, v_slab))

    out = jax.block_until_ready(encoder_block(x, w_slab, v_slab))
    ref = jax.block_until_ready(encoder_block_ref(x, params))

    np.testing.assert_allclose(np.asarray(out), np.asarray(ref), rtol=1e-3, atol=1e-3)

    print("KERNEL_OK")
</pallas_src>

<mosaic_0001>
module attributes {stable_mosaic.version = 11 : i64} {
  func.func @encoder_block_kernel(%arg0: memref<16x32xf32, #tpu.memory_space<vmem>>, %arg1: memref<160x96xf32, #tpu.memory_space<vmem>>, %arg2: memref<8x128xf32, #tpu.memory_space<vmem>>, %arg3: memref<16x32xf32, #tpu.memory_space<vmem>>) attributes {dimension_semantics = [], scalar_prefetch = 0 : i64, scratch_operands = 0 : i64, tpu.core_type = #tpu.core_type<tc>} {
    %c0 = arith.constant 0 : index
    %c0_0 = arith.constant 0 : index
    %0 = vector.load %arg0[%c0, %c0_0] : memref<16x32xf32, #tpu.memory_space<vmem>>, vector<16x32xf32>
    %c0_1 = arith.constant 0 : index
    %c0_2 = arith.constant 0 : index
    %1 = vector.load %arg1[%c0_1, %c0_2] : memref<160x96xf32, #tpu.memory_space<vmem>>, vector<32x96xf32>
    %c32 = arith.constant 32 : index
    %c0_3 = arith.constant 0 : index
    %2 = vector.load %arg1[%c32, %c0_3] : memref<160x96xf32, #tpu.memory_space<vmem>>, vector<32x32xf32>
    %c64 = arith.constant 64 : index
    %c0_4 = arith.constant 0 : index
    %3 = vector.load %arg1[%c64, %c0_4] : memref<160x96xf32, #tpu.memory_space<vmem>>, vector<32x64xf32>
    %c96 = arith.constant 96 : index
    %c0_5 = arith.constant 0 : index
    %4 = vector.load %arg1[%c96, %c0_5] : memref<160x96xf32, #tpu.memory_space<vmem>>, vector<64x32xf32>
    %c0_6 = arith.constant 0 : index
    %c0_7 = arith.constant 0 : index
    %5 = vector.load %arg2[%c0_6, %c0_7] : memref<8x128xf32, #tpu.memory_space<vmem>>, vector<8x128xf32>
    %6 = vector.extract_strided_slice %5 {offsets = [0, 0], sizes = [1, 96], strides = [1, 1]} : vector<8x128xf32> to vector<1x96xf32>
    %7 = vector.extract_strided_slice %5 {offsets = [1, 0], sizes = [1, 32], strides = [1, 1]} : vector<8x128xf32> to vector<1x32xf32>
    %8 = vector.extract_strided_slice %5 {offsets = [2, 0], sizes = [1, 32], strides = [1, 1]} : vector<8x128xf32> to vector<1x32xf32>
    %9 = vector.extract_strided_slice %5 {offsets = [3, 0], sizes = [1, 32], strides = [1, 1]} : vector<8x128xf32> to vector<1x32xf32>
    %10 = vector.extract_strided_slice %5 {offsets = [4, 0], sizes = [1, 64], strides = [1, 1]} : vector<8x128xf32> to vector<1x64xf32>
    %11 = vector.extract_strided_slice %5 {offsets = [5, 0], sizes = [1, 32], strides = [1, 1]} : vector<8x128xf32> to vector<1x32xf32>
    %12 = vector.extract_strided_slice %5 {offsets = [6, 0], sizes = [1, 32], strides = [1, 1]} : vector<8x128xf32> to vector<1x32xf32>
    %13 = vector.extract_strided_slice %5 {offsets = [7, 0], sizes = [1, 32], strides = [1, 1]} : vector<8x128xf32> to vector<1x32xf32>
    %cst = arith.constant dense<0.000000e+00> : vector<16x96xf32>
    %14 = tpu.matmul %0, %1, %cst {dimension_numbers = #tpu.dot_dimension_numbers<[1], [0], [0], [1], [0, 0, 1, 1], [], []>} : vector<16x32xf32>, vector<32x96xf32>, vector<16x96xf32> -> vector<16x96xf32>
    %15 = vector.broadcast %6 : vector<1x96xf32> to vector<16x96xf32>
    %16 = arith.addf %14, %15 : vector<16x96xf32>
    %17 = vector.extract_strided_slice %16 {offsets = [0, 0], sizes = [8, 24], strides = [1, 1]} : vector<16x96xf32> to vector<8x24xf32>
    %18 = vector.extract_strided_slice %17 {offsets = [0, 0], sizes = [8, 8], strides = [1, 1]} : vector<8x24xf32> to vector<8x8xf32>
    %19 = vector.extract_strided_slice %17 {offsets = [0, 8], sizes = [8, 8], strides = [1, 1]} : vector<8x24xf32> to vector<8x8xf32>
    %20 = vector.extract_strided_slice %17 {offsets = [0, 16], sizes = [8, 8], strides = [1, 1]} : vector<8x24xf32> to vector<8x8xf32>
    %cst_8 = arith.constant dense<0.000000e+00> : vector<8x8xf32>
    %21 = tpu.matmul %18, %19, %cst_8 {dimension_numbers = #tpu.dot_dimension_numbers<[1], [1], [0], [0], [0, 0, 1, 0], [], []>} : vector<8x8xf32>, vector<8x8xf32>, vector<8x8xf32> -> vector<8x8xf32>
    %cst_9 = arith.constant dense<0xFF800000> : vector<8xf32>
    %22 = vector.multi_reduction <maximumf>, %21, %cst_9 [1] : vector<8x8xf32> to vector<8xf32>
    %23 = vector.shape_cast %22 : vector<8xf32> to vector<8x1xf32>
    %24 = vector.broadcast %23 : vector<8x1xf32> to vector<8x8xf32>
    %25 = arith.subf %21, %24 : vector<8x8xf32>
    %26 = math.exp %25 : vector<8x8xf32>
    %cst_10 = arith.constant dense<0.000000e+00> : vector<8xf32>
    %27 = vector.multi_reduction <add>, %26, %cst_10 [1] : vector<8x8xf32> to vector<8xf32>
    %28 = vector.shape_cast %27 : vector<8xf32> to vector<8x1xf32>
    %29 = vector.broadcast %28 : vector<8x1xf32> to vector<8x8xf32>
    %30 = arith.divf %26, %29 : vector<8x8xf32>
    %cst_11 = arith.constant dense<0.000000e+00> : vector<8x8xf32>
    %31 = tpu.matmul %30, %20, %cst_11 {dimension_numbers = #tpu.dot_dimension_numbers<[1], [0], [0], [1], [0, 0, 1, 1], [], []>} : vector<8x8xf32>, vector<8x8xf32>, vector<8x8xf32> -> vector<8x8xf32>
    %32 = vector.extract_strided_slice %16 {offsets = [0, 24], sizes = [8, 24], strides = [1, 1]} : vector<16x96xf32> to vector<8x24xf32>
    %33 = vector.extract_strided_slice %32 {offsets = [0, 0], sizes = [8, 8], strides = [1, 1]} : vector<8x24xf32> to vector<8x8xf32>
    %34 = vector.extract_strided_slice %32 {offsets = [0, 8], sizes = [8, 8], strides = [1, 1]} : vector<8x24xf32> to vector<8x8xf32>
    %35 = vector.extract_strided_slice %32 {offsets = [0, 16], sizes = [8, 8], strides = [1, 1]} : vector<8x24xf32> to vector<8x8xf32>
    %cst_12 = arith.constant dense<0.000000e+00> : vector<8x8xf32>
    %36 = tpu.matmul %33, %34, %cst_12 {dimension_numbers = #tpu.dot_dimension_numbers<[1], [1], [0], [0], [0, 0, 1, 0], [], []>} : vector<8x8xf32>, vector<8x8xf32>, vector<8x8xf32> -> vector<8x8xf32>
    %cst_13 = arith.constant dense<0xFF800000> : vector<8xf32>
    %37 = vector.multi_reduction <maximumf>, %36, %cst_13 [1] : vector<8x8xf32> to vector<8xf32>
    %38 = vector.shape_cast %37 : vector<8xf32> to vector<8x1xf32>
    %39 = vector.broadcast %38 : vector<8x1xf32> to vector<8x8xf32>
    %40 = arith.subf %36, %39 : vector<8x8xf32>
    %41 = math.exp %40 : vector<8x8xf32>
    %cst_14 = arith.constant dense<0.000000e+00> : vector<8xf32>
    %42 = vector.multi_reduction <add>, %41, %cst_14 [1] : vector<8x8xf32> to vector<8xf32>
    %43 = vector.shape_cast %42 : vector<8xf32> to vector<8x1xf32>
    %44 = vector.broadcast %43 : vector<8x1xf32> to vector<8x8xf32>
    %45 = arith.divf %41, %44 : vector<8x8xf32>
    %cst_15 = arith.constant dense<0.000000e+00> : vector<8x8xf32>
    %46 = tpu.matmul %45, %35, %cst_15 {dimension_numbers = #tpu.dot_dimension_numbers<[1], [0], [0], [1], [0, 0, 1, 1], [], []>} : vector<8x8xf32>, vector<8x8xf32>, vector<8x8xf32> -> vector<8x8xf32>
    %47 = vector.extract_strided_slice %16 {offsets = [0, 48], sizes = [8, 24], strides = [1, 1]} : vector<16x96xf32> to vector<8x24xf32>
    %48 = vector.extract_strided_slice %47 {offsets = [0, 0], sizes = [8, 8], strides = [1, 1]} : vector<8x24xf32> to vector<8x8xf32>
    %49 = vector.extract_strided_slice %47 {offsets = [0, 8], sizes = [8, 8], strides = [1, 1]} : vector<8x24xf32> to vector<8x8xf32>
    %50 = vector.extract_strided_slice %47 {offsets = [0, 16], sizes = [8, 8], strides = [1, 1]} : vector<8x24xf32> to vector<8x8xf32>
    %cst_16 = arith.constant dense<0.000000e+00> : vector<8x8xf32>
    %51 = tpu.matmul %48, %49, %cst_16 {dimension_numbers = #tpu.dot_dimension_numbers<[1], [1], [0], [0], [0, 0, 1, 0], [], []>} : vector<8x8xf32>, vector<8x8xf32>, vector<8x8xf32> -> vector<8x8xf32>
    %cst_17 = arith.constant dense<0xFF800000> : vector<8xf32>
    %52 = vector.multi_reduction <maximumf>, %51, %cst_17 [1] : vector<8x8xf32> to vector<8xf32>
    %53 = vector.shape_cast %52 : vector<8xf32> to vector<8x1xf32>
    %54 = vector.broadcast %53 : vector<8x1xf32> to vector<8x8xf32>
    %55 = arith.subf %51, %54 : vector<8x8xf32>
    %56 = math.exp %55 : vector<8x8xf32>
    %cst_18 = arith.constant dense<0.000000e+00> : vector<8xf32>
    %57 = vector.multi_reduction <add>, %56, %cst_18 [1] : vector<8x8xf32> to vector<8xf32>
    %58 = vector.shape_cast %57 : vector<8xf32> to vector<8x1xf32>
    %59 = vector.broadcast %58 : vector<8x1xf32> to vector<8x8xf32>
    %60 = arith.divf %56, %59 : vector<8x8xf32>
    %cst_19 = arith.constant dense<0.000000e+00> : vector<8x8xf32>
    %61 = tpu.matmul %60, %50, %cst_19 {dimension_numbers = #tpu.dot_dimension_numbers<[1], [0], [0], [1], [0, 0, 1, 1], [], []>} : vector<8x8xf32>, vector<8x8xf32>, vector<8x8xf32> -> vector<8x8xf32>
    %62 = vector.extract_strided_slice %16 {offsets = [0, 72], sizes = [8, 24], strides = [1, 1]} : vector<16x96xf32> to vector<8x24xf32>
    %63 = vector.extract_strided_slice %62 {offsets = [0, 0], sizes = [8, 8], strides = [1, 1]} : vector<8x24xf32> to vector<8x8xf32>
    %64 = vector.extract_strided_slice %62 {offsets = [0, 8], sizes = [8, 8], strides = [1, 1]} : vector<8x24xf32> to vector<8x8xf32>
    %65 = vector.extract_strided_slice %62 {offsets = [0, 16], sizes = [8, 8], strides = [1, 1]} : vector<8x24xf32> to vector<8x8xf32>
    %cst_20 = arith.constant dense<0.000000e+00> : vector<8x8xf32>
    %66 = tpu.matmul %63, %64, %cst_20 {dimension_numbers = #tpu.dot_dimension_numbers<[1], [1], [0], [0], [0, 0, 1, 0], [], []>} : vector<8x8xf32>, vector<8x8xf32>, vector<8x8xf32> -> vector<8x8xf32>
    %cst_21 = arith.constant dense<0xFF800000> : vector<8xf32>
    %67 = vector.multi_reduction <maximumf>, %66, %cst_21 [1] : vector<8x8xf32> to vector<8xf32>
    %68 = vector.shape_cast %67 : vector<8xf32> to vector<8x1xf32>
    %69 = vector.broadcast %68 : vector<8x1xf32> to vector<8x8xf32>
    %70 = arith.subf %66, %69 : vector<8x8xf32>
    %71 = math.exp %70 : vector<8x8xf32>
    %cst_22 = arith.constant dense<0.000000e+00> : vector<8xf32>
    %72 = vector.multi_reduction <add>, %71, %cst_22 [1] : vector<8x8xf32> to vector<8xf32>
    %73 = vector.shape_cast %72 : vector<8xf32> to vector<8x1xf32>
    %74 = vector.broadcast %73 : vector<8x1xf32> to vector<8x8xf32>
    %75 = arith.divf %71, %74 : vector<8x8xf32>
    %cst_23 = arith.constant dense<0.000000e+00> : vector<8x8xf32>
    %76 = tpu.matmul %75, %65, %cst_23 {dimension_numbers = #tpu.dot_dimension_numbers<[1], [0], [0], [1], [0, 0, 1, 1], [], []>} : vector<8x8xf32>, vector<8x8xf32>, vector<8x8xf32> -> vector<8x8xf32>
    %77 = tpu.concatenate %31, %46, %61, %76 in 1 : vector<8x8xf32>, vector<8x8xf32>, vector<8x8xf32>, vector<8x8xf32> -> vector<8x32xf32>
    %78 = vector.extract_strided_slice %16 {offsets = [8, 0], sizes = [8, 24], strides = [1, 1]} : vector<16x96xf32> to vector<8x24xf32>
    %79 = vector.extract_strided_slice %78 {offsets = [0, 0], sizes = [8, 8], strides = [1, 1]} : vector<8x24xf32> to vector<8x8xf32>
    %80 = vector.extract_strided_slice %78 {offsets = [0, 8], sizes = [8, 8], strides = [1, 1]} : vector<8x24xf32> to vector<8x8xf32>
    %81 = vector.extract_strided_slice %78 {offsets = [0, 16], sizes = [8, 8], strides = [1, 1]} : vector<8x24xf32> to vector<8x8xf32>
    %cst_24 = arith.constant dense<0.000000e+00> : vector<8x8xf32>
    %82 = tpu.matmul %79, %80, %cst_24 {dimension_numbers = #tpu.dot_dimension_numbers<[1], [1], [0], [0], [0, 0, 1, 0], [], []>} : vector<8x8xf32>, vector<8x8xf32>, vector<8x8xf32> -> vector<8x8xf32>
    %cst_25 = arith.constant dense<0xFF800000> : vector<8xf32>
    %83 = vector.multi_reduction <maximumf>, %82, %cst_25 [1] : vector<8x8xf32> to vector<8xf32>
    %84 = vector.shape_cast %83 : vector<8xf32> to vector<8x1xf32>
    %85 = vector.broadcast %84 : vector<8x1xf32> to vector<8x8xf32>
    %86 = arith.subf %82, %85 : vector<8x8xf32>
    %87 = math.exp %86 : vector<8x8xf32>
    %cst_26 = arith.constant dense<0.000000e+00> : vector<8xf32>
    %88 = vector.multi_reduction <add>, %87, %cst_26 [1] : vector<8x8xf32> to vector<8xf32>
    %89 = vector.shape_cast %88 : vector<8xf32> to vector<8x1xf32>
    %90 = vector.broadcast %89 : vector<8x1xf32> to vector<8x8xf32>
    %91 = arith.divf %87, %90 : vector<8x8xf32>
    %cst_27 = arith.constant dense<0.000000e+00> : vector<8x8xf32>
    %92 = tpu.matmul %91, %81, %cst_27 {dimension_numbers = #tpu.dot_dimension_numbers<[1], [0], [0], [1], [0, 0, 1, 1], [], []>} : vector<8x8xf32>, vector<8x8xf32>, vector<8x8xf32> -> vector<8x8xf32>
    %93 = vector.extract_strided_slice %16 {offsets = [8, 24], sizes = [8, 24], strides = [1, 1]} : vector<16x96xf32> to vector<8x24xf32>
    %94 = vector.extract_strided_slice %93 {offsets = [0, 0], sizes = [8, 8], strides = [1, 1]} : vector<8x24xf32> to vector<8x8xf32>
    %95 = vector.extract_strided_slice %93 {offsets = [0, 8], sizes = [8, 8], strides = [1, 1]} : vector<8x24xf32> to vector<8x8xf32>
    %96 = vector.extract_strided_slice %93 {offsets = [0, 16], sizes = [8, 8], strides = [1, 1]} : vector<8x24xf32> to vector<8x8xf32>
    %cst_28 = arith.constant dense<0.000000e+00> : vector<8x8xf32>
    %97 = tpu.matmul %94, %95, %cst_28 {dimension_numbers = #tpu.dot_dimension_numbers<[1], [1], [0], [0], [0, 0, 1, 0], [], []>} : vector<8x8xf32>, vector<8x8xf32>, vector<8x8xf32> -> vector<8x8xf32>
    %cst_29 = arith.constant dense<0xFF800000> : vector<8xf32>
    %98 = vector.multi_reduction <maximumf>, %97, %cst_29 [1] : vector<8x8xf32> to vector<8xf32>
    %99 = vector.shape_cast %98 : vector<8xf32> to vector<8x1xf32>
    %100 = vector.broadcast %99 : vector<8x1xf32> to vector<8x8xf32>
    %101 = arith.subf %97, %100 : vector<8x8xf32>
    %102 = math.exp %101 : vector<8x8xf32>
    %cst_30 = arith.constant dense<0.000000e+00> : vector<8xf32>
    %103 = vector.multi_reduction <add>, %102, %cst_30 [1] : vector<8x8xf32> to vector<8xf32>
    %104 = vector.shape_cast %103 : vector<8xf32> to vector<8x1xf32>
    %105 = vector.broadcast %104 : vector<8x1xf32> to vector<8x8xf32>
    %106 = arith.divf %102, %105 : vector<8x8xf32>
    %cst_31 = arith.constant dense<0.000000e+00> : vector<8x8xf32>
    %107 = tpu.matmul %106, %96, %cst_31 {dimension_numbers = #tpu.dot_dimension_numbers<[1], [0], [0], [1], [0, 0, 1, 1], [], []>} : vector<8x8xf32>, vector<8x8xf32>, vector<8x8xf32> -> vector<8x8xf32>
    %108 = vector.extract_strided_slice %16 {offsets = [8, 48], sizes = [8, 24], strides = [1, 1]} : vector<16x96xf32> to vector<8x24xf32>
    %109 = vector.extract_strided_slice %108 {offsets = [0, 0], sizes = [8, 8], strides = [1, 1]} : vector<8x24xf32> to vector<8x8xf32>
    %110 = vector.extract_strided_slice %108 {offsets = [0, 8], sizes = [8, 8], strides = [1, 1]} : vector<8x24xf32> to vector<8x8xf32>
    %111 = vector.extract_strided_slice %108 {offsets = [0, 16], sizes = [8, 8], strides = [1, 1]} : vector<8x24xf32> to vector<8x8xf32>
    %cst_32 = arith.constant dense<0.000000e+00> : vector<8x8xf32>
    %112 = tpu.matmul %109, %110, %cst_32 {dimension_numbers = #tpu.dot_dimension_numbers<[1], [1], [0], [0], [0, 0, 1, 0], [], []>} : vector<8x8xf32>, vector<8x8xf32>, vector<8x8xf32> -> vector<8x8xf32>
    %cst_33 = arith.constant dense<0xFF800000> : vector<8xf32>
    %113 = vector.multi_reduction <maximumf>, %112, %cst_33 [1] : vector<8x8xf32> to vector<8xf32>
    %114 = vector.shape_cast %113 : vector<8xf32> to vector<8x1xf32>
    %115 = vector.broadcast %114 : vector<8x1xf32> to vector<8x8xf32>
    %116 = arith.subf %112, %115 : vector<8x8xf32>
    %117 = math.exp %116 : vector<8x8xf32>
    %cst_34 = arith.constant dense<0.000000e+00> : vector<8xf32>
    %118 = vector.multi_reduction <add>, %117, %cst_34 [1] : vector<8x8xf32> to vector<8xf32>
    %119 = vector.shape_cast %118 : vector<8xf32> to vector<8x1xf32>
    %120 = vector.broadcast %119 : vector<8x1xf32> to vector<8x8xf32>
    %121 = arith.divf %117, %120 : vector<8x8xf32>
    %cst_35 = arith.constant dense<0.000000e+00> : vector<8x8xf32>
    %122 = tpu.matmul %121, %111, %cst_35 {dimension_numbers = #tpu.dot_dimension_numbers<[1], [0], [0], [1], [0, 0, 1, 1], [], []>} : vector<8x8xf32>, vector<8x8xf32>, vector<8x8xf32> -> vector<8x8xf32>
    %123 = vector.extract_strided_slice %16 {offsets = [8, 72], sizes = [8, 24], strides = [1, 1]} : vector<16x96xf32> to vector<8x24xf32>
    %124 = vector.extract_strided_slice %123 {offsets = [0, 0], sizes = [8, 8], strides = [1, 1]} : vector<8x24xf32> to vector<8x8xf32>
    %125 = vector.extract_strided_slice %123 {offsets = [0, 8], sizes = [8, 8], strides = [1, 1]} : vector<8x24xf32> to vector<8x8xf32>
    %126 = vector.extract_strided_slice %123 {offsets = [0, 16], sizes = [8, 8], strides = [1, 1]} : vector<8x24xf32> to vector<8x8xf32>
    %cst_36 = arith.constant dense<0.000000e+00> : vector<8x8xf32>
    %127 = tpu.matmul %124, %125, %cst_36 {dimension_numbers = #tpu.dot_dimension_numbers<[1], [1], [0], [0], [0, 0, 1, 0], [], []>} : vector<8x8xf32>, vector<8x8xf32>, vector<8x8xf32> -> vector<8x8xf32>
    %cst_37 = arith.constant dense<0xFF800000> : vector<8xf32>
    %128 = vector.multi_reduction <maximumf>, %127, %cst_37 [1] : vector<8x8xf32> to vector<8xf32>
    %129 = vector.shape_cast %128 : vector<8xf32> to vector<8x1xf32>
    %130 = vector.broadcast %129 : vector<8x1xf32> to vector<8x8xf32>
    %131 = arith.subf %127, %130 : vector<8x8xf32>
    %132 = math.exp %131 : vector<8x8xf32>
    %cst_38 = arith.constant dense<0.000000e+00> : vector<8xf32>
    %133 = vector.multi_reduction <add>, %132, %cst_38 [1] : vector<8x8xf32> to vector<8xf32>
    %134 = vector.shape_cast %133 : vector<8xf32> to vector<8x1xf32>
    %135 = vector.broadcast %134 : vector<8x1xf32> to vector<8x8xf32>
    %136 = arith.divf %132, %135 : vector<8x8xf32>
    %cst_39 = arith.constant dense<0.000000e+00> : vector<8x8xf32>
    %137 = tpu.matmul %136, %126, %cst_39 {dimension_numbers = #tpu.dot_dimension_numbers<[1], [0], [0], [1], [0, 0, 1, 1], [], []>} : vector<8x8xf32>, vector<8x8xf32>, vector<8x8xf32> -> vector<8x8xf32>
    %138 = tpu.concatenate %92, %107, %122, %137 in 1 : vector<8x8xf32>, vector<8x8xf32>, vector<8x8xf32>, vector<8x8xf32> -> vector<8x32xf32>
    %139 = tpu.concatenate %77, %138 in 0 : vector<8x32xf32>, vector<8x32xf32> -> vector<16x32xf32>
    %cst_40 = arith.constant dense<0.000000e+00> : vector<16x32xf32>
    %140 = tpu.matmul %139, %2, %cst_40 {dimension_numbers = #tpu.dot_dimension_numbers<[1], [0], [0], [1], [0, 0, 1, 1], [], []>} : vector<16x32xf32>, vector<32x32xf32>, vector<16x32xf32> -> vector<16x32xf32>
    %141 = vector.broadcast %7 : vector<1x32xf32> to vector<16x32xf32>
    %142 = arith.addf %140, %141 : vector<16x32xf32>
    %143 = arith.addf %0, %142 : vector<16x32xf32>
    %cst_41 = arith.constant dense<0.000000e+00> : vector<16xf32>
    %144 = vector.multi_reduction <add>, %143, %cst_41 [1] : vector<16x32xf32> to vector<16xf32>
    %145 = vector.shape_cast %144 : vector<16xf32> to vector<16x1xf32>
    %cst_42 = arith.constant 3.200000e+01 : f32
    %146 = vector.broadcast %cst_42 : f32 to vector<16x1xf32>
    %147 = arith.divf %145, %146 : vector<16x1xf32>
    %148 = vector.broadcast %147 : vector<16x1xf32> to vector<16x32xf32>
    %149 = arith.subf %143, %148 : vector<16x32xf32>
    %150 = arith.mulf %149, %149 : vector<16x32xf32>
    %cst_43 = arith.constant dense<0.000000e+00> : vector<16xf32>
    %151 = vector.multi_reduction <add>, %150, %cst_43 [1] : vector<16x32xf32> to vector<16xf32>
    %152 = vector.shape_cast %151 : vector<16xf32> to vector<16x1xf32>
    %cst_44 = arith.constant 3.200000e+01 : f32
    %153 = vector.broadcast %cst_44 : f32 to vector<16x1xf32>
    %154 = arith.divf %152, %153 : vector<16x1xf32>
    %155 = vector.broadcast %147 : vector<16x1xf32> to vector<16x32xf32>
    %156 = arith.subf %143, %155 : vector<16x32xf32>
    %cst_45 = arith.constant 9.99999997E-7 : f32
    %157 = vector.broadcast %cst_45 : f32 to vector<16x1xf32>
    %158 = arith.addf %154, %157 : vector<16x1xf32>
    %159 = math.rsqrt %158 : vector<16x1xf32>
    %160 = vector.broadcast %159 : vector<16x1xf32> to vector<16x32xf32>
    %161 = arith.mulf %156, %160 : vector<16x32xf32>
    %162 = vector.broadcast %8 : vector<1x32xf32> to vector<16x32xf32>
    %163 = arith.mulf %161, %162 : vector<16x32xf32>
    %164 = vector.broadcast %9 : vector<1x32xf32> to vector<16x32xf32>
    %165 = arith.addf %163, %164 : vector<16x32xf32>
    %cst_46 = arith.constant dense<0.000000e+00> : vector<16x64xf32>
    %166 = tpu.matmul %165, %3, %cst_46 {dimension_numbers = #tpu.dot_dimension_numbers<[1], [0], [0], [1], [0, 0, 1, 1], [], []>} : vector<16x32xf32>, vector<32x64xf32>, vector<16x64xf32> -> vector<16x64xf32>
    %167 = vector.broadcast %10 : vector<1x64xf32> to vector<16x64xf32>
    %168 = arith.addf %166, %167 : vector<16x64xf32>
    %cst_47 = arith.constant 0.000000e+00 : f32
    %169 = vector.broadcast %cst_47 : f32 to vector<16x64xf32>
    %170 = arith.maximumf %168, %169 : vector<16x64xf32>
    %cst_48 = arith.constant dense<0.000000e+00> : vector<16x32xf32>
    %171 = tpu.matmul %170, %4, %cst_48 {dimension_numbers = #tpu.dot_dimension_numbers<[1], [0], [0], [1], [0, 0, 1, 1], [], []>} : vector<16x64xf32>, vector<64x32xf32>, vector<16x32xf32> -> vector<16x32xf32>
    %172 = vector.broadcast %11 : vector<1x32xf32> to vector<16x32xf32>
    %173 = arith.addf %171, %172 : vector<16x32xf32>
    %174 = arith.addf %165, %173 : vector<16x32xf32>
    %cst_49 = arith.constant dense<0.000000e+00> : vector<16xf32>
    %175 = vector.multi_reduction <add>, %174, %cst_49 [1] : vector<16x32xf32> to vector<16xf32>
    %176 = vector.shape_cast %175 : vector<16xf32> to vector<16x1xf32>
    %cst_50 = arith.constant 3.200000e+01 : f32
    %177 = vector.broadcast %cst_50 : f32 to vector<16x1xf32>
    %178 = arith.divf %176, %177 : vector<16x1xf32>
    %179 = vector.broadcast %178 : vector<16x1xf32> to vector<16x32xf32>
    %180 = arith.subf %174, %179 : vector<16x32xf32>
    %181 = arith.mulf %180, %180 : vector<16x32xf32>
    %cst_51 = arith.constant dense<0.000000e+00> : vector<16xf32>
    %182 = vector.multi_reduction <add>, %181, %cst_51 [1] : vector<16x32xf32> to vector<16xf32>
    %183 = vector.shape_cast %182 : vector<16xf32> to vector<16x1xf32>
    %cst_52 = arith.constant 3.200000e+01 : f32
    %184 = vector.broadcast %cst_52 : f32 to vector<16x1xf32>
    %185 = arith.divf %183, %184 : vector<16x1xf32>
    %186 = vector.broadcast %178 : vector<16x1xf32> to vector<16x32xf32>
    %187 = arith.subf %174, %186 : vector<16x32xf32>
    %cst_53 = arith.constant 9.99999997E-7 : f32
    %188 = vector.broadcast %cst_53 : f32 to vector<16x1xf32>
    %189 = arith.addf %185, %188 : vector<16x1xf32>
    %190 = math.rsqrt %189 : vector<16x1xf32>
    %191 = vector.broadcast %190 : vector<16x1xf32> to vector<16x32xf32>
    %192 = arith.mulf %187, %191 : vector<16x32xf32>
    %193 = vector.broadcast %12 : vector<1x32xf32> to vector<16x32xf32>
    %194 = arith.mulf %192, %193 : vector<16x32xf32>
    %195 = vector.broadcast %13 : vector<1x32xf32> to vector<16x32xf32>
    %196 = arith.addf %194, %195 : vector<16x32xf32>
    %c0_54 = arith.constant 0 : index
    %c0_55 = arith.constant 0 : index
    %197 = vector.load %arg3[%c0_54, %c0_55] : memref<16x32xf32, #tpu.memory_space<vmem>>, vector<16x32xf32>
    tpu.vector_store %arg3[%c0_54, %c0_55], %196 {strides = array<i32>} : memref<16x32xf32, #tpu.memory_space<vmem>>, vector<16x32xf32>,
    return
  }
}

</mosaic_0001>

<bundles_post_ra>
// kernel: encoder_block.1
= control target key start
LH: loop header
LB: loop body
LE: loop exit
PB: predicated region body
PF: predicated region fallthrough
CT: control target
= control target key end

     0   :  { %8 = vsyncpa [#allocation3], 0  ;;  %s2497_s0 = inlined_call_operand.hbm [shape: f32[16,32], index: 0, kind: input, shape index: {}]   ;;  %s2498_s1 = inlined_call_operand.hbm [shape: f32[160,96], index: 1, kind: input, shape index: {}]   ;;  %s2499_s2 = inlined_call_operand.hbm [shape: f32[8,128], index: 2, kind: input, shape index: {}]   ;;  %s2500_s3 = inlined_call_operand.hbm [shape: f32[16,32], index: 3, kind: output, shape index: {}]  }
   0x1   :  { %9 = vsyncpa [#allocation6], 0 }
   0x2   :  { %10 = vsyncpa [#allocation4], 0  ;;  %s2244_s12 = smov [#allocation5]   ;;  %s2245_s14 = smov [#allocation2]  }
   0x3   :  { %s28_s13 = sshll.u32 %s2244_s12, 4  ;;  %s16_s15 = sshll.u32 %s2245_s14, 4  ;;  %s29_s13 = int_to_ptr.vmem [resolvable:$true] %s28_s13  ;;  %s17_s15 = int_to_ptr.vmem [resolvable:$true] %s16_s15 }
   0x4   :  { %s2166_s16 = scalar_lea.vmem %s29_s13, 2560  ;;  %p2171_p1 = scmp.lt.s32.totalorder %s29_s13, %s29_s13 }
   0x5   :  { %p2167_p0 = scmp.ne.s32.totalorder %s29_s13, %s2166_s16  ;;  %p2172_p2 = scmp.lt.s32.totalorder %s2166_s16, %s2166_s16 }
   0x7   :  { %p2173_p3 = por %p2172_p2, %p2171_p1 }
   0x9   :  { %p2174_p4 = pnand %p2173_p3, %p2167_p0 }
   0xb   :  { %2177 = shalt.err (!%p2174_p4)
}
   0xc   :  { %s2246_s17 = smov 128   ;;  %s2247_s18 = smov 8  }
   0xd   :  { %34 = dma.hbm_to_vmem [thread:$0]  %s2498_s1, 2560, %s29_s13, [#allocation6], %s2246_s17, %s2246_s17, %s2247_s18  }
   0xe   :  { %s2186_s21 = scalar_lea.vmem %s17_s15, 256  ;;  %p2191_p6 = scmp.lt.s32.totalorder %s17_s15, %s17_s15 }
   0xf   :  { %p2187_p5 = scmp.ne.s32.totalorder %s17_s15, %s2186_s21  ;;  %p2192_p7 = scmp.lt.s32.totalorder %s2186_s21, %s2186_s21 }
  0x11   :  { %p2193_p8 = por %p2192_p7, %p2191_p6 }
  0x13   :  { %p2194_p9 = pnand %p2193_p8, %p2187_p5 }
  0x15   :  { %2197 = shalt.err (!%p2194_p9)
}
  0x16   :  { %22 = dma.hbm_to_vmem [thread:$0]  %s2497_s0, 256, %s17_s15, [#allocation3], %s2246_s17, %s2246_s17, %s2247_s18  }
  0x17   :  { %s2248_s24 = smov [#allocation7]  }
  0x18   :  { %s41_s25 = sshll.u32 %s2248_s24, 4  ;;  %s42_s25 = int_to_ptr.vmem [resolvable:$true] %s41_s25 }
  0x19   :  { %s2206_s26 = scalar_lea.vmem %s42_s25, 128  ;;  %p2211_p11 = scmp.lt.s32.totalorder %s42_s25, %s42_s25 }
  0x1a   :  { %p2207_p10 = scmp.ne.s32.totalorder %s42_s25, %s2206_s26  ;;  %p2212_p12 = scmp.lt.s32.totalorder %s2206_s26, %s2206_s26 }
  0x1c   :  { %p2213_p13 = por %p2212_p12, %p2211_p11 }
  0x1e   :  { %p2214_p0 = pnand %p2213_p13, %p2207_p10 }
  0x20   :  { %2217 = shalt.err (!%p2214_p0)
}
  0x21   :  { %44 = dma.hbm_to_vmem [thread:$0]  %s2499_s2, 128, %s42_s25, [#allocation6]  }
  0x22   :  { %2238 = dma.done.wait [#allocation3], 256  }
  0x23   :  { %2239 = vsyncadd [#allocation3], 4294967040 }
  0x24   :  { %2240 = dma.done.wait [#allocation6], 2688  }
  0x25   :  { %2241 = vsyncadd [#allocation6], 4294964608  ;;  %vm81_vm0 = vcmask 261120   ;;  %v59_v0 = vld [vmem:[#allocation5 + $0x18] sm:$0xff]  ;;  %v58_v1 = vld [vmem:[#allocation5 + $0x10] sm:$0xff]  ;;  %v2249_v6 = vmov 0.0   ;;  %v77_v7 = vlaneseq }
  0x26   :  { %1965 = vmatprep.subr.mxu1 %v59_v0  ;;  %v2300_v2 = vld [vmem:[#allocation2] sm:$0xff]  ;;  %v57_v3 = vld [vmem:[#allocation5 + $0x8] sm:$0xff]  ;;  %v56_v4 = vld [vmem:[#allocation5] sm:$0xff]  ;;  %1986 = vmatprep.subr.mxu0 %v2249_v6  ;;  %vm2250_vm1 = vmmov 0   ;;  %s2251_s0 = smov 104   ;;  %s2252_s2 = smov 120  }
  0x27   :  { %1966 = vmatpush3.msra.mxu1 %v59_v0  ;;  %1973 = vmatprep.mubr.msk.f32.mxu1 %vm81_vm0, %v2300_v2  ;;  %v2304_v5 = vld [vmem:[#allocation2 + $0x8] sm:$0xff]  ;;  %v2310_v8 = vshrl.u32 %v77_v7, 7  ;;  %v2317_v10 = vld [vmem:[#allocation7] sm:$0xff]  ;;  %s2253_s28 = smov 72   ;;  %s2254_s29 = smov 96   ;;  %vm166_vm2 = vcmask 64512  }
  0x28   :  { %1967 = vmatprep.subr.mxu1 %v58_v1  ;;  %1988 = vmatprep.mubr.msk.f32.mxu0 %vm2250_vm1, %v2249_v6  ;;  %s2255_s30 = smov 48   ;;  %s2256_s4 = smov 80   ;;  %vm836_vm3 = vcmask 130048   ;;  %vm838_vm4 = vcmask 195584   ;;  %vm1731_vm5 = vcmask 523264  }
  0x29   :  { %1968 = vmatpush3.msra.mxu1 %v58_v1  ;;  %v79_v9 = vsub.s32 0, %v2310_v8  ;;  %s2257_s5 = smov 56   ;;  %s2258_s6 = smov 88  }
  0x2a   :  { %1969 = vmatprep.subr.mxu1 %v57_v3  ;;  %s2259_s7 = smov 112   ;;  %s2260_s8 = smov 40  }
  0x2b   :  { %1970 = vmatpush3.msra.mxu1 %v57_v3  ;;  %v80_v12 = vrot.slane %v2317_v10, %v79_v9  ;;  %s2261_s9 = smov 64   ;;  %s2262_s10 = smov 16  }
  0x2c   :  { %1971 = vmatprep.subr.mxu1 %v56_v4  ;;  %s2263_s11 = smov 24   ;;  %s2264_s12 = smov [#allocation8]  }
  0x2d   :  { %1972 = vmatpush3.msra.mxu1 %v56_v4  ;;  %s1860_s13 = sshll.u32 %s2264_s12, 4  ;;  %s1861_s13 = int_to_ptr.vmem [resolvable:$true] %s1860_s13 }
  0x2e   :  { %1974 = vmatmul.mubr.msk.f32.vlgmr.msra.gmra.mxu1 %vm81_vm0, %v2304_v5  ;;  %1976 = vmatprep.subr.mxu1 %v2249_v6  ;;  %s2218_s14 = scalar_lea.vmem %s1861_s13, 256  ;;  %p2223_p2 = scmp.lt.s32.totalorder %s1861_s13, %s1861_s13 }
  0x2f   :  { %1978 = vmatprep.mubr.msk.f32.mxu1 %vm2250_vm1, %v2249_v6  ;;  %p2219_p1 = scmp.ne.s32.totalorder %s1861_s13, %s2218_s14  ;;  %p2224_p3 = scmp.lt.s32.totalorder %s2218_s14, %s2218_s14 }
  0x31   :  { %p2225_p4 = por %p2224_p3, %p2223_p2 }
  0x33   :  { %p2226_p5 = pnand %p2225_p4, %p2219_p1 }
  0xee   :  { %v1975_v11 = vpop.f32.mrf.mxu1 }
  0xef   :  { %v2328_v15 = vadd.f32 %v1975_v11, %v80_v12 }
  0xf0   :  { %v154_v13 = vpop.f32.mrf.mxu1 }
  0xf1   :  { %v2320_v14 = vadd.f32 %v154_v13, %v80_v12 }
  0xf3   :  { %328 = vrot.lane.b32.xlu1 %v2320_v14, %s2251_s0  ;;  %164 = vrot.lane.b32.xlu0 %v2320_v14, %s2252_s2 }
  0xf7   :  { %495 = vrot.lane.b32.xlu1 %v2320_v14, %s2253_s28  ;;  %330 = vrot.lane.b32.xlu0 %v2320_v14, %s2254_s29 }
  0xfb   :  { %660 = vrot.lane.b32.xlu1 %v2320_v14, %s2255_s30  ;;  %493 = vrot.lane.b32.xlu0 %v2320_v14, %s2256_s4 }
  0xff   :  { %841 = vrot.lane.b32.xlu1 %v2328_v15, %s2252_s2  ;;  %658 = vrot.lane.b32.xlu0 %v2320_v14, %s2257_s5 }
 0x103   :  { %1004 = vrot.lane.b32.xlu1 %v2328_v15, %s2251_s0  ;;  %1006 = vrot.lane.b32.xlu0 %v2328_v15, %s2254_s29 }
 0x107   :  { %1169 = vrot.lane.b32.xlu1 %v2328_v15, %s2256_s4  ;;  %1171 = vrot.lane.b32.xlu0 %v2328_v15, %s2253_s28 }
 0x10b   :  { %1334 = vrot.lane.b32.xlu1 %v2328_v15, %s2257_s5  ;;  %1336 = vrot.lane.b32.xlu0 %v2328_v15, %s2255_s30 }
 0x10f   :  { %417 = vrot.lane.b32.xlu1 %v2320_v14, %s2258_s6  ;;  %252 = vrot.lane.b32.xlu0 %v2320_v14, %s2259_s7 }
 0x165   :  { %v329_v16 = vpop.permute.xlu1 %328  ;;  %v165_v17 = vpop.permute.xlu0 %164 }
 0x166   :  { %1977 = vmatpush3.xpose.msk.msra.mxu1 %vm166_vm2, %v165_v17 }
 0x167   :  { %1981 = vmatprep.subr.mxu1 %v2249_v6 }
 0x169   :  { %v496_v18 = vpop.permute.xlu1 %495  ;;  %1979 = vmatmul.mubr.msk.f32.vlgmr.msra.gmra.mxu1 %vm166_vm2, %v2320_v14  ;;  %v331_v19 = vpop.permute.xlu0 %330 }
 0x16a   :  { %1987 = vmatpush3.xpose.msk.msra.mxu0 %vm166_vm2, %v331_v19  ;;  %1983 = vmatprep.mubr.msk.f32.mxu1 %vm2250_vm1, %v2249_v6 }
 0x16b   :  { %1996 = vmatprep.subr.mxu0 %v2249_v6 }
 0x16d   :  { %v661_v20 = vpop.permute.xlu1 %660  ;;  %1989 = vmatmul.mubr.msk.f32.vlgmr.msra.gmra.mxu0 %vm166_vm2, %v329_v16  ;;  %v494_v21 = vpop.permute.xlu0 %493 }
 0x16e   :  { %1997 = vmatpush3.xpose.msk.msra.mxu0 %vm166_vm2, %v496_v18  ;;  %1998 = vmatprep.mubr.msk.f32.mxu0 %vm2250_vm1, %v2249_v6 }
 0x16f   :  { %2006 = vmatprep.subr.mxu0 %v2249_v6 }
 0x171   :  { %1999 = vmatmul.mubr.msk.f32.vlgmr.msra.gmra.mxu0 %vm166_vm2, %v494_v21  ;;  %v659_v22 = vpop.permute.xlu0 %658  ;;  %v842_v23 = vpop.permute.xlu1 %841 }
 0x172   :  { %2007 = vmatpush3.xpose.msk.msra.mxu0 %vm166_vm2, %v661_v20  ;;  %2008 = vmatprep.mubr.msk.f32.mxu0 %vm2250_vm1, %v2249_v6 }
 0x173   :  { %2016 = vmatprep.subr.mxu0 %v2249_v6 }
 0x175   :  { %2009 = vmatmul.mubr.msk.f32.vlgmr.msra.gmra.mxu0 %vm166_vm2, %v659_v22  ;;  %v1007_v24 = vpop.permute.xlu0 %1006  ;;  %v1005_v25 = vpop.permute.xlu1 %1004 }
 0x176   :  { %2017 = vmatpush3.xpose.msk.msra.mxu0 %vm166_vm2, %v842_v23  ;;  %2018 = vmatprep.mubr.msk.f32.mxu0 %vm2250_vm1, %v2249_v6 }
 0x177   :  { %2026 = vmatprep.subr.mxu0 %v2249_v6 }
 0x179   :  { %2019 = vmatmul.mubr.msk.f32.vlgmr.msra.gmra.mxu0 %vm166_vm2, %v2328_v15  ;;  %v1172_v26 = vpop.permute.xlu0 %1171  ;;  %v1170_v28 = vpop.permute.xlu1 %1169 }
 0x17a   :  { %2027 = vmatpush3.xpose.msk.msra.mxu0 %vm166_vm2, %v1007_v24  ;;  %2028 = vmatprep.mubr.msk.f32.mxu0 %vm2250_vm1, %v2249_v6 }
 0x17b   :  { %2036 = vmatprep.subr.mxu0 %v2249_v6 }
 0x17d   :  { %2029 = vmatmul.mubr.msk.f32.vlgmr.msra.gmra.mxu0 %vm166_vm2, %v1005_v25  ;;  %v1337_v27 = vpop.permute.xlu0 %1336  ;;  %v1335_v30 = vpop.permute.xlu1 %1334 }
 0x17e   :  { %2037 = vmatpush3.xpose.msk.msra.mxu0 %vm166_vm2, %v1172_v26  ;;  %2038 = vmatprep.mubr.msk.f32.mxu0 %vm2250_vm1, %v2249_v6 }
 0x17f   :  { %2046 = vmatprep.subr.mxu0 %v2249_v6 }
 0x181   :  { %2039 = vmatmul.mubr.msk.f32.vlgmr.msra.gmra.mxu0 %vm166_vm2, %v1170_v28  ;;  %v253_v29 = vpop.permute.xlu0 %252  ;;  %v2394_v55 = vpop.permute.xlu1 %417 }
 0x182   :  { %1982 = vmatpush3.msra.mxu1 %v253_v29  ;;  %2047 = vmatpush3.xpose.msk.msra.mxu0 %vm166_vm2, %v1337_v27 }
 0x183   :  { %2048 = vmatprep.mubr.msk.f32.mxu0 %vm2250_vm1, %v2249_v6  ;;  %1991 = vmatprep.subr.mxu1 %v2249_v6 }
 0x185   :  { %2049 = vmatmul.mubr.msk.f32.vlgmr.msra.gmra.mxu0 %vm166_vm2, %v1335_v30 }
 0x229   :  { %v237_v31 = vpop.f32.mrf.mxu1 }
 0x22a   :  { %v241_v32 = vsel %vm166_vm2, %v237_v31, -inf }
 0x22b   :  { %242 = vmax.xlane.f32.xlu0 %v241_v32  ;;  %v1980_v33 = vpop.f32.mrf.mxu1 }
 0x22d   :  { %v402_v34 = vpop.f32.mrf.mxu0 }
 0x22e   :  { %v406_v35 = vsel %vm166_vm2, %v402_v34, -inf }
 0x22f   :  { %407 = vmax.xlane.f32.xlu1 %v406_v35  ;;  %v1990_v36 = vpop.f32.mrf.mxu0 }
 0x231   :  { %v567_v37 = vpop.f32.mrf.mxu0 }
 0x232   :  { %v571_v38 = vsel %vm166_vm2, %v567_v37, -inf }
 0x233   :  { %572 = vmax.xlane.f32.xlu0 %v571_v38  ;;  %v2000_v39 = vpop.f32.mrf.mxu0 }
 0x235   :  { %v732_v40 = vpop.f32.mrf.mxu0 }
 0x236   :  { %v736_v41 = vsel %vm166_vm2, %v732_v40, -inf }
 0x237   :  { %737 = vmax.xlane.f32.xlu0 %v736_v41  ;;  %v2010_v42 = vpop.f32.mrf.mxu0 }
 0x239   :  { %v913_v43 = vpop.f32.mrf.mxu0 }
 0x23a   :  { %v917_v44 = vsel %vm166_vm2, %v913_v43, -inf }
 0x23b   :  { %918 = vmax.xlane.f32.xlu1 %v917_v44  ;;  %v2020_v45 = vpop.f32.mrf.mxu0 }
 0x23d   :  { %v1078_v46 = vpop.f32.mrf.mxu0 }
 0x23e   :  { %v1082_v47 = vsel %vm166_vm2, %v1078_v46, -inf }
 0x23f   :  { %1083 = vmax.xlane.f32.xlu0 %v1082_v47  ;;  %v2030_v48 = vpop.f32.mrf.mxu0 }
 0x241   :  { %v1243_v49 = vpop.f32.mrf.mxu0 }
 0x242   :  { %v1247_v50 = vsel %vm166_vm2, %v1243_v49, -inf }
 0x243   :  { %1248 = vmax.xlane.f32.xlu1 %v1247_v50  ;;  %v2040_v51 = vpop.f32.mrf.mxu0 }
 0x245   :  { %v1408_v52 = vpop.f32.mrf.mxu0 }
 0x246   :  { %v1412_v53 = vsel %vm166_vm2, %v1408_v52, -inf }
 0x247   :  { %1413 = vmax.xlane.f32.xlu0 %v1412_v53  ;;  %v2050_v54 = vpop.f32.mrf.mxu0 }
 0x254   :  { %747 = vrot.lane.b32.xlu1 %v2320_v14, %s2260_s8 }
 0x25d   :  { %582 = vrot.lane.b32.xlu0 %v2320_v14, %s2261_s9 }
 0x2b4   :  { %v243_v56 = vpop.xlane.xlu0 %242 }
 0x2b5   :  { %v244_v57 = vsub.f32 %v237_v31, %v243_v56 }
 0x2b7   :  { %v245_v58 = vmul.f32 1.442695, %v244_v57 }
 0x2b8   :  { %v408_v59 = vpop.xlane.xlu1 %407 }
 0x2b9   :  { %2118 = vpow2.f32 %v245_v58  ;;  %v409_v60 = vsub.f32 %v402_v34, %v408_v59 }
 0x2bb   :  { %v410_v61 = vmul.f32 1.442695, %v409_v60 }
 0x2bc   :  { %v573_v62 = vpop.xlane.xlu0 %572 }
 0x2bd   :  { %2120 = vpow2.f32 %v410_v61  ;;  %v574_v63 = vsub.f32 %v567_v37, %v573_v62 }
 0x2bf   :  { %v575_v0 = vmul.f32 1.442695, %v574_v63 }
 0x2c0   :  { %v738_v1 = vpop.xlane.xlu0 %737 }
 0x2c1   :  { %2122 = vpow2.f32 %v575_v0  ;;  %v739_v3 = vsub.f32 %v732_v40, %v738_v1 }
 0x2c3   :  { %v740_v4 = vmul.f32 1.442695, %v739_v3 }
 0x2c4   :  { %v919_v18 = vpop.xlane.xlu1 %918 }
 0x2c5   :  { %2124 = vpow2.f32 %v740_v4  ;;  %v920_v19 = vsub.f32 %v913_v43, %v919_v18  ;;  %v61_v18 = vld [vmem:[#allocation5 + $0x28] sm:$0xff] }
 0x2c6   :  { %v2119_v7 = vpop.eup %2118 }
 0x2c7   :  { %v247_v9 = vsel %vm166_vm2, %v2119_v7, 0.0  ;;  %v921_v23 = vmul.f32 1.442695, %v920_v19  ;;  %v60_v19 = vld [vmem:[#allocation5 + $0x20] sm:$0xff] }
 0x2c8   :  { %248 = vadd.xlane.f32.xlu1 %v247_v9  ;;  %v1084_v20 = vpop.xlane.xlu0 %1083 }
 0x2c9   :  { %v1085_v22 = vsub.f32 %v1078_v46, %v1084_v20  ;;  %2126 = vpow2.f32 %v921_v23 }
 0x2ca   :  { %v2121_v11 = vpop.eup %2120 }
 0x2cb   :  { %v412_v12 = vsel %vm166_vm2, %v2121_v11, 0.0  ;;  %v1086_v26 = vmul.f32 1.442695, %v1085_v22 }
 0x2cc   :  { %413 = vadd.xlane.f32.xlu0 %v412_v12  ;;  %v1249_v21 = vpop.xlane.xlu1 %1248 }
 0x2cd   :  { %v1250_v24 = vsub.f32 %v1243_v49, %v1249_v21  ;;  %2128 = vpow2.f32 %v1086_v26 }
 0x2ce   :  { %v2123_v13 = vpop.eup %2122 }
 0x2cf   :  { %v577_v14 = vsel %vm166_vm2, %v2123_v13, 0.0  ;;  %v1251_v27 = vmul.f32 1.442695, %v1250_v24 }
 0x2d0   :  { %578 = vadd.xlane.f32.xlu1 %v577_v14  ;;  %v1414_v25 = vpop.xlane.xlu0 %1413  ;;  %v748_v38 = vpop.permute.xlu1 %747 }
 0x2d1   :  { %v1415_v28 = vsub.f32 %v1408_v52, %v1414_v25  ;;  %2130 = vpow2.f32 %v1251_v27 }
 0x2d2   :  { %v2399_v16 = vpop.eup %2124 }
 0x2d3   :  { %v742_v17 = vsel %vm166_vm2, %v2399_v16, 0.0  ;;  %v1416_v29 = vmul.f32 1.442695, %v1415_v28 }
 0x2d4   :  { %743 = vadd.xlane.f32.xlu0 %v742_v17  ;;  %v583_v39 = vpop.permute.xlu0 %582  ;;  %v63_v17 = vld [vmem:[#allocation5 + $0x38] sm:$0xff] }
 0x2d5   :  { %2132 = vpow2.f32 %v1416_v29  ;;  %2056 = vmatprep.subr.mxu0 %v63_v17 }
 0x2d6   :  { %v2127_v30 = vpop.eup %2126  ;;  %2057 = vmatpush3.msra.mxu0 %v63_v17 }
 0x2d7   :  { %v923_v32 = vsel %vm166_vm2, %v2127_v30, 0.0 }
 0x2da   :  { %v2407_v31 = vpop.eup %2128 }
 0x2db   :  { %v1088_v35 = vsel %vm166_vm2, %v2407_v31, 0.0 }
 0x2de   :  { %v2410_v33 = vpop.eup %2130 }
 0x2df   :  { %v1253_v34 = vsel %vm166_vm2, %v2410_v33, 0.0 }
 0x2e1   :  { %1093 = vrot.lane.b32.xlu1 %v2328_v15, %s2258_s6 }
 0x2e2   :  { %v2416_v36 = vpop.eup %2132 }
 0x2e3   :  { %v1418_v37 = vsel %vm166_vm2, %v2416_v36, 0.0 }
 0x2ea   :  { %928 = vrot.lane.b32.xlu0 %v2328_v15, %s2259_s7 }
 0x305   :  { %924 = vadd.xlane.f32.xlu1 %v923_v32 }
 0x309   :  { %1254 = vadd.xlane.f32.xlu1 %v1253_v34  ;;  %1089 = vadd.xlane.f32.xlu0 %v1088_v35 }
 0x30d   :  { %1419 = vadd.xlane.f32.xlu1 %v1418_v37 }
 0x31e   :  { %1423 = vrot.lane.b32.xlu1 %v2328_v15, %s2260_s8 }
 0x31f   :  { %1258 = vrot.lane.b32.xlu0 %v2328_v15, %s2261_s9 }
 0x351   :  { %v249_v40 = vpop.xlane.xlu1 %248 }
 0x352   :  { %2134 = vrcp.f32 %v249_v40  ;;  %v1516_v40 = vsub.s32 1, %v2310_v8 }
 0x355   :  { %v414_v41 = vpop.xlane.xlu0 %413 }
 0x356   :  { %2136 = vrcp.f32 %v414_v41  ;;  %v1517_v41 = vrot.slane %v2317_v10, %v1516_v40 }
 0x359   :  { %v579_v42 = vpop.xlane.xlu1 %578 }
 0x35a   :  { %2138 = vrcp.f32 %v579_v42 }
 0x35d   :  { %v744_v43 = vpop.xlane.xlu0 %743  ;;  %v1094_v52 = vpop.permute.xlu1 %1093 }
 0x35e   :  { %2140 = vrcp.f32 %v744_v43 }
 0x35f   :  { %v2135_v44 = vpop.eup %2134 }
 0x360   :  { %v251_v45 = vmul.f32 %v2135_v44, %v2119_v7 }
 0x361   :  { %v929_v51 = vpop.permute.xlu0 %928 }
 0x362   :  { %1984 = vmatmul.mubr.msk.f32.vlgmr.msra.gmra.mxu1 %vm166_vm2, %v251_v45 }
 0x363   :  { %v2137_v46 = vpop.eup %2136  ;;  %1992 = vmatpush3.msra.mxu1 %v2394_v55  ;;  %1993 = vmatprep.mubr.msk.f32.mxu1 %vm2250_vm1, %v2249_v6 }
 0x364   :  { %2001 = vmatprep.subr.mxu1 %v2249_v6  ;;  %v416_v15 = vmul.f32 %v2137_v46, %v2121_v11 }
 0x366   :  { %1994 = vmatmul.mubr.msk.f32.vlgmr.msra.gmra.mxu1 %vm166_vm2, %v416_v15 }
 0x367   :  { %v2139_v47 = vpop.eup %2138  ;;  %2002 = vmatpush3.msra.mxu1 %v583_v39  ;;  %2003 = vmatprep.mubr.msk.f32.mxu1 %vm2250_vm1, %v2249_v6 }
 0x368   :  { %2011 = vmatprep.subr.mxu1 %v2249_v6  ;;  %v581_v48 = vmul.f32 %v2139_v47, %v2123_v13 }
 0x36a   :  { %2004 = vmatmul.mubr.msk.f32.vlgmr.msra.gmra.mxu1 %vm166_vm2, %v581_v48 }
 0x36b   :  { %v2141_v49 = vpop.eup %2140  ;;  %2012 = vmatpush3.msra.mxu1 %v748_v38  ;;  %2013 = vmatprep.mubr.msk.f32.mxu1 %vm2250_vm1, %v2249_v6 }
 0x36c   :  { %2021 = vmatprep.subr.mxu1 %v2249_v6  ;;  %v746_v50 = vmul.f32 %v2141_v49, %v2399_v16 }
 0x36e   :  { %2014 = vmatmul.mubr.msk.f32.vlgmr.msra.gmra.mxu1 %vm166_vm2, %v746_v50 }
 0x36f   :  { %2022 = vmatpush3.msra.mxu1 %v929_v51  ;;  %2023 = vmatprep.mubr.msk.f32.mxu1 %vm2250_vm1, %v2249_v6 }
 0x370   :  { %2031 = vmatprep.subr.mxu1 %v2249_v6 }
 0x38e   :  { %v925_v53 = vpop.xlane.xlu1 %924 }
 0x38f   :  { %2142 = vrcp.f32 %v925_v53 }
 0x392   :  { %v1255_v54 = vpop.xlane.xlu1 %1254  ;;  %v1090_v55 = vpop.xlane.xlu0 %1089 }
 0x393   :  { %2144 = vrcp.f32 %v1090_v55 }
 0x394   :  { %2146 = vrcp.f32 %v1255_v54 }
 0x396   :  { %v1420_v56 = vpop.xlane.xlu1 %1419  ;;  %v1259_v62 = vpop.permute.xlu0 %1258 }
 0x397   :  { %2148 = vrcp.f32 %v1420_v56 }
 0x39a   :  { %v1424_v1 = vpop.permute.xlu1 %1423 }
 0x39c   :  { %v2143_v57 = vpop.eup %2142 }
 0x39d   :  { %v927_v58 = vmul.f32 %v2143_v57, %v2127_v30 }
 0x39f   :  { %2024 = vmatmul.mubr.msk.f32.vlgmr.msra.gmra.mxu1 %vm166_vm2, %v927_v58  ;;  %v67_v58 = vld [vmem:[#allocation5 + $0x58] sm:$0xff] }
 0x3a0   :  { %2032 = vmatpush3.msra.mxu1 %v1094_v52  ;;  %2033 = vmatprep.mubr.msk.f32.mxu1 %vm2250_vm1, %v2249_v6  ;;  %v2145_v59 = vpop.eup %2144 }
 0x3a1   :  { %2041 = vmatprep.subr.mxu1 %v2249_v6  ;;  %v1092_v60 = vmul.f32 %v2145_v59, %v2407_v31  ;;  %v2147_v61 = vpop.eup %2146  ;;  %v65_v59 = vld [vmem:[#allocation5 + $0x48] sm:$0xff] }
 0x3a2   :  { %v1257_v63 = vmul.f32 %v2147_v61, %v2410_v33  ;;  %v75_v61 = vld [vmem:[#allocation5 + $0x98] sm:$0xff] }
 0x3a3   :  { %2034 = vmatmul.mubr.msk.f32.vlgmr.msra.gmra.mxu1 %vm166_vm2, %v1092_v60  ;;  %v64_v60 = vld [vmem:[#allocation5 + $0x40] sm:$0xff] }
 0x3a4   :  { %2042 = vmatpush3.msra.mxu1 %v1259_v62  ;;  %2043 = vmatprep.mubr.msk.f32.mxu1 %vm2250_vm1, %v2249_v6  ;;  %v2149_v0 = vpop.eup %2148  ;;  %v74_v62 = vld [vmem:[#allocation5 + $0x90] sm:$0xff] }
 0x3a5   :  { %2051 = vmatprep.subr.mxu1 %v2249_v6  ;;  %v1422_v3 = vmul.f32 %v2149_v0, %v2416_v36  ;;  %v72_v0 = vld [vmem:[#allocation5 + $0x80] sm:$0xff] }
 0x3a7   :  { %2044 = vmatmul.mubr.msk.f32.vlgmr.msra.gmra.mxu1 %vm166_vm2, %v1257_v63  ;;  %v73_v63 = vld [vmem:[#allocation5 + $0x88] sm:$0xff] }
 0x3a8   :  { %2052 = vmatpush3.msra.mxu1 %v1424_v1  ;;  %2053 = vmatprep.mubr.msk.f32.mxu1 %vm2250_vm1, %v2249_v6  ;;  %v62_v6 = vld [vmem:[#allocation5 + $0x30] sm:$0xff] }
 0x3a9   :  { %2058 = vmatprep.subr.mxu0 %v62_v6  ;;  %2067 = vmatprep.subr.mxu1 %v67_v58 }
 0x3aa   :  { %2059 = vmatpush3.msra.mxu0 %v62_v6 }
 0x3ab   :  { %2054 = vmatmul.mubr.msk.f32.vlgmr.msra.gmra.mxu1 %vm166_vm2, %v1422_v3  ;;  %2060 = vmatprep.subr.mxu0 %v61_v18 }
 0x3ac   :  { %2061 = vmatpush3.msra.mxu0 %v61_v18  ;;  %2068 = vmatpush3.msra.mxu1 %v67_v58 }
 0x3ad   :  { %2062 = vmatprep.subr.mxu0 %v60_v19 }
 0x3ae   :  { %2063 = vmatpush3.msra.mxu0 %v60_v19 }
 0x3af   :  { %2078 = vmatprep.subr.mxu0 %v75_v61 }
 0x422   :  { %v324_v4 = vpop.f32.mrf.mxu1 }
 0x424   :  { %v1985_v7 = vpop.f32.mrf.mxu1 }
 0x426   :  { %v489_v9 = vpop.f32.mrf.mxu1 }
 0x427   :  { %824 = vrot.lane.b32.xlu0 %v489_v9, %s2247_s18 }
 0x428   :  { %v1995_v11 = vpop.f32.mrf.mxu1 }
 0x42a   :  { %v654_v12 = vpop.f32.mrf.mxu1 }
 0x42b   :  { %828 = vrot.lane.b32.xlu1 %v654_v12, %s2262_s10  ;;  %v1630_v12 = vsub.s32 2, %v2310_v8 }
 0x42c   :  { %v2005_v13 = vpop.f32.mrf.mxu1 }
 0x42d   :  { %v1636_v13 = vsub.s32 3, %v2310_v8 }
 0x42e   :  { %v819_v14 = vpop.f32.mrf.mxu1 }
 0x42f   :  { %832 = vrot.lane.b32.xlu1 %v819_v14, %s2263_s11  ;;  %v1631_v14 = vrot.slane %v2317_v10, %v1630_v12  ;;  %v1637_v6 = vrot.slane %v2317_v10, %v1636_v13 }
 0x430   :  { %v2015_v16 = vpop.f32.mrf.mxu1 }
 0x45f   :  { %v1000_v20 = vpop.f32.mrf.mxu1 }
 0x461   :  { %v2025_v21 = vpop.f32.mrf.mxu1 }
 0x463   :  { %v1165_v22 = vpop.f32.mrf.mxu1 }
 0x464   :  { %1500 = vrot.lane.b32.xlu0 %v1165_v22, %s2247_s18 }
 0x465   :  { %v2035_v23 = vpop.f32.mrf.mxu1 }
 0x467   :  { %v1330_v24 = vpop.f32.mrf.mxu1 }
 0x468   :  { %1504 = vrot.lane.b32.xlu0 %v1330_v24, %s2262_s10  ;;  %v71_v24 = vld [vmem:[#allocation5 + $0x78] sm:$0xff] }
 0x469   :  { %v2045_v25 = vpop.f32.mrf.mxu1 }
 0x46a   :  { %v70_v25 = vld [vmem:[#allocation5 + $0x70] sm:$0xff] }
 0x46b   :  { %v1495_v26 = vpop.f32.mrf.mxu1 }
 0x46c   :  { %1508 = vrot.lane.b32.xlu1 %v1495_v26, %s2263_s11  ;;  %v69_v26 = vld [vmem:[#allocation5 + $0x68] sm:$0xff] }
 0x46d   :  { %v2055_v27 = vpop.f32.mrf.mxu1 }
 0x46e   :  { %v68_v27 = vld [vmem:[#allocation5 + $0x60] sm:$0xff] }
 0x499   :  { %v825_v28 = vpop.permute.xlu0 %824 }
 0x49a   :  { %v835_v30 = vsel %vm166_vm2, %v324_v4, %v825_v28  ;;  %v1642_v28 = vsub.s32 4, %v2310_v8 }
 0x49d   :  { %v829_v29 = vpop.permute.xlu1 %828 }
 0x49e   :  { %v837_v31 = vsel %vm836_vm3, %v835_v30, %v829_v29  ;;  %v1643_v29 = vrot.slane %v2317_v10, %v1642_v28 }
 0x4a1   :  { %v833_v32 = vpop.permute.xlu1 %832 }
 0x4a2   :  { %v839_v33 = vsel %vm838_vm4, %v837_v31, %v833_v32 }
 0x4a3   :  { %2064 = vmatprep.mubr.msk.f32.mxu0 %vm81_vm0, %v839_v33 }
 0x4d6   :  { %v1501_v34 = vpop.permute.xlu0 %1500 }
 0x4d7   :  { %v1511_v36 = vsel %vm166_vm2, %v1000_v20, %v1501_v34 }
 0x4da   :  { %v1505_v35 = vpop.permute.xlu0 %1504 }
 0x4db   :  { %v1512_v37 = vsel %vm836_vm3, %v1511_v36, %v1505_v35  ;;  %v1729_v36 = vsub.s32 5, %v2310_v8 }
 0x4de   :  { %v1509_v38 = vpop.permute.xlu1 %1508 }
 0x4df   :  { %v1513_v39 = vsel %vm838_vm4, %v1512_v37, %v1509_v38  ;;  %v1730_v37 = vrot.slane %v2317_v10, %v1729_v36 }
 0x4e0   :  { %2065 = vmatmul.mubr.msk.f32.vlgmr.msra.gmra.mxu0 %vm81_vm0, %v1513_v39 }
 0x4e1   :  { %2079 = vmatpush3.msra.mxu0 %v75_v61 }
 0x4e2   :  { %2080 = vmatprep.subr.mxu0 %v74_v62 }
 0x4e3   :  { %2081 = vmatpush3.msra.mxu0 %v74_v62 }
 0x4e4   :  { %2082 = vmatprep.subr.mxu0 %v73_v63 }
 0x4e5   :  { %2083 = vmatpush3.msra.mxu0 %v73_v63 }
 0x4e6   :  { %2084 = vmatprep.subr.mxu0 %v72_v0 }
 0x4e7   :  { %2085 = vmatpush3.msra.mxu0 %v72_v0 }
 0x4e8   :  { %2086 = vmatprep.subr.mxu0 %v71_v24 }
 0x4e9   :  { %2087 = vmatpush3.msra.mxu0 %v71_v24 }
 0x4ea   :  { %2088 = vmatprep.subr.mxu0 %v70_v25 }
 0x4eb   :  { %2089 = vmatpush3.msra.mxu0 %v70_v25 }
 0x4ec   :  { %2090 = vmatprep.subr.mxu0 %v69_v26 }
 0x4ed   :  { %2091 = vmatpush3.msra.mxu0 %v69_v26 }
 0x4ee   :  { %2092 = vmatprep.subr.mxu0 %v68_v27 }
 0x4ef   :  { %2093 = vmatpush3.msra.mxu0 %v68_v27 }
 0x5a0   :  { %v2066_v42 = vpop.f32.mrf.mxu0 }
 0x5a1   :  { %v1596_v43 = vadd.f32 %v2066_v42, %v1517_v41 }
 0x5a2   :  { %v1590_v44 = vpop.f32.mrf.mxu0 }
 0x5a3   :  { %v1591_v45 = vadd.f32 %v1590_v44, %v1517_v41  ;;  %v1600_v46 = vadd.f32 %v1596_v43, %v2304_v5 }
 0x5a5   :  { %v1604_v15 = vsel %vm81_vm0, %v1600_v46, 0.0  ;;  %v1599_v47 = vadd.f32 %v1591_v45, %v2300_v2  ;;  %v66_v2 = vld [vmem:[#allocation5 + $0x50] sm:$0xff] }
 0x5a6   :  { %1605 = vadd.xlane.f32.xlu1 %v1604_v15  ;;  %2069 = vmatprep.subr.mxu1 %v66_v2 }
 0x5a7   :  { %v1601_v48 = vsel %vm81_vm0, %v1599_v47, 0.0  ;;  %2070 = vmatpush3.msra.mxu1 %v66_v2 }
 0x5a8   :  { %1602 = vadd.xlane.f32.xlu0 %v1601_v48  ;;  %2071 = vmatprep.subr.mxu1 %v65_v59 }
 0x5a9   :  { %2072 = vmatpush3.msra.mxu1 %v65_v59  ;;  %v1843_v59 = vsub.s32 6, %v2310_v8 }
 0x5aa   :  { %2073 = vmatprep.subr.mxu1 %v64_v60 }
 0x5ab   :  { %2074 = vmatpush3.msra.mxu1 %v64_v60  ;;  %v1849_v60 = vsub.s32 7, %v2310_v8  ;;  %v1844_v61 = vrot.slane %v2317_v10, %v1843_v59 }
 0x5ad   :  { %v1850_v0 = vrot.slane %v2317_v10, %v1849_v60 }
 0x62f   :  { %v1606_v49 = vpop.xlane.xlu1 %1605 }
 0x630   :  { %v1609_v50 = vmul.f32 0.03125, %v1606_v49 }
 0x631   :  { %v1603_v51 = vpop.xlane.xlu0 %1602 }
 0x632   :  { %v1608_v52 = vmul.f32 0.03125, %v1603_v51  ;;  %v1611_v53 = vsub.f32 %v1600_v46, %v1609_v50 }
 0x634   :  { %v1610_v54 = vsub.f32 %v1599_v47, %v1608_v52  ;;  %v1613_v57 = vmul.f32 %v1611_v53, %v1611_v53 }
 0x636   :  { %v1612_v55 = vmul.f32 %v1610_v54, %v1610_v54  ;;  %v1617_v5 = vsel %vm81_vm0, %v1613_v57, 0.0 }
 0x638   :  { %v1614_v56 = vsel %vm81_vm0, %v1612_v55, 0.0 }
 0x639   :  { %1615 = vadd.xlane.f32.xlu0 %v1614_v56 }
 0x63d   :  { %1618 = vadd.xlane.f32.xlu0 %v1617_v5 }
 0x6c2   :  { %v1616_v1 = vpop.xlane.xlu0 %1615 }
 0x6c3   :  { %v1620_v3 = vmul.f32 0.03125, %v1616_v1 }
 0x6c5   :  { %v1622_v4 = vadd.f32 1e-06, %v1620_v3 }
 0x6c6   :  { %v1619_v7 = vpop.xlane.xlu0 %1618 }
 0x6c7   :  { %2150 = vrsqrt.f32 %v1622_v4  ;;  %v1621_v9 = vmul.f32 0.03125, %v1619_v7 }
 0x6c9   :  { %v1623_v11 = vadd.f32 1e-06, %v1621_v9 }
 0x6cb   :  { %2152 = vrsqrt.f32 %v1623_v11 }
 0x6d4   :  { %v2151_v16 = vpop.eup %2150 }
 0x6d5   :  { %v1626_v17 = vmul.f32 %v2151_v16, %v1610_v54 }
 0x6d7   :  { %v1632_v18 = vmul.f32 %v1631_v14, %v1626_v17 }
 0x6d8   :  { %v2153_v19 = vpop.eup %2152 }
 0x6d9   :  { %v1627_v20 = vmul.f32 %v2153_v19, %v1611_v53  ;;  %v1638_v21 = vadd.f32 %v1637_v6, %v1632_v18 }
 0x6db   :  { %v1633_v22 = vmul.f32 %v1631_v14, %v1627_v20  ;;  %2075 = vmatprep.mubr.msk.f32.mxu1 %vm81_vm0, %v1638_v21 }
 0x6dd   :  { %v1639_v23 = vadd.f32 %v1637_v6, %v1633_v22 }
 0x6df   :  { %2076 = vmatmul.mubr.msk.f32.vlgmr.msra.gmra.mxu1 %vm81_vm0, %v1639_v23 }
 0x79f   :  { %v2077_v30 = vpop.f32.mrf.mxu1 }
 0x7a0   :  { %v1722_v31 = vadd.f32 %v2077_v30, %v1643_v29 }
 0x7a1   :  { %v1716_v32 = vpop.f32.mrf.mxu1 }
 0x7a2   :  { %v1717_v33 = vadd.f32 %v1716_v32, %v1643_v29  ;;  %v1726_v35 = vmax.f32 %v1722_v31, 0.0 }
 0x7a4   :  { %v1725_v34 = vmax.f32 %v1717_v33, 0.0 }
 0x7a6   :  { %2094 = vmatprep.mubr.msk.f32.mxu0 %vm1731_vm5, %v1725_v34 }
 0x7a7   :  { %2095 = vmatmul.mubr.msk.f32.vlgmr.msra.gmra.mxu0 %vm1731_vm5, %v1726_v35 }
 0x867   :  { %v2096_v38 = vpop.f32.mrf.mxu0 }
 0x868   :  { %v1810_v39 = vadd.f32 %v2096_v38, %v1730_v37 }
 0x869   :  { %v1804_v40 = vpop.f32.mrf.mxu0 }
 0x86a   :  { %v1805_v41 = vadd.f32 %v1804_v40, %v1730_v37  ;;  %v1814_v42 = vadd.f32 %v1810_v39, %v1639_v23 }
 0x86c   :  { %v1818_v43 = vsel %vm81_vm0, %v1814_v42, 0.0  ;;  %v1813_v44 = vadd.f32 %v1805_v41, %v1638_v21 }
 0x86d   :  { %1819 = vadd.xlane.f32.xlu0 %v1818_v43 }
 0x86e   :  { %v1815_v45 = vsel %vm81_vm0, %v1813_v44, 0.0 }
 0x86f   :  { %1816 = vadd.xlane.f32.xlu1 %v1815_v45 }
 0x8f6   :  { %v1820_v46 = vpop.xlane.xlu0 %1819 }
 0x8f7   :  { %v1822_v15 = vmul.f32 0.03125, %v1820_v46 }
 0x8f8   :  { %v1817_v47 = vpop.xlane.xlu1 %1816 }
 0x8f9   :  { %v1824_v48 = vsub.f32 %v1814_v42, %v1822_v15  ;;  %v1821_v49 = vmul.f32 0.03125, %v1817_v47 }
 0x8fb   :  { %v1823_v50 = vsub.f32 %v1813_v44, %v1821_v49  ;;  %v1826_v51 = vmul.f32 %v1824_v48, %v1824_v48 }
 0x8fd   :  { %v1830_v52 = vsel %vm81_vm0, %v1826_v51, 0.0  ;;  %v1825_v53 = vmul.f32 %v1823_v50, %v1823_v50 }
 0x8fe   :  { %1831 = vadd.xlane.f32.xlu0 %v1830_v52 }
 0x8ff   :  { %v1827_v54 = vsel %vm81_vm0, %v1825_v53, 0.0 }
 0x900   :  { %1828 = vadd.xlane.f32.xlu1 %v1827_v54 }
 0x987   :  { %v1832_v55 = vpop.xlane.xlu0 %1831 }
 0x988   :  { %v1834_v56 = vmul.f32 0.03125, %v1832_v55 }
 0x989   :  { %v1829_v57 = vpop.xlane.xlu1 %1828 }
 0x98a   :  { %v1836_v5 = vadd.f32 1e-06, %v1834_v56  ;;  %v1833_v58 = vmul.f32 0.03125, %v1829_v57 }
 0x98c   :  { %2154 = vrsqrt.f32 %v1836_v5  ;;  %v1835_v2 = vadd.f32 1e-06, %v1833_v58 }
 0x98e   :  { %2156 = vrsqrt.f32 %v1835_v2 }
 0x999   :  { %v2155_v62 = vpop.eup %2154 }
 0x99a   :  { %v1840_v63 = vmul.f32 %v2155_v62, %v1824_v48 }
 0x99b   :  { %v2157_v1 = vpop.eup %2156 }
 0x99c   :  { %v1839_v3 = vmul.f32 %v2157_v1, %v1823_v50  ;;  %v1846_v4 = vmul.f32 %v1844_v61, %v1840_v63 }
 0x99e   :  { %v1845_v7 = vmul.f32 %v1844_v61, %v1839_v3  ;;  %v1852_v9 = vadd.f32 %v1850_v0, %v1846_v4 }
 0x9a0   :  { %v1851_v11 = vadd.f32 %v1850_v0, %v1845_v7  ;;  %1854 = vst.msk [vmem:[#allocation8 + $0x8] sm:$0xff] %vm81_vm0, %v1852_v9 }
 0x9a2   :  { %1853 = vst.msk [vmem:[#allocation8] sm:$0xff] %vm81_vm0, %v1851_v11 }
 0x9a3   :  { %2229 = shalt.err (!%p2226_p5)
}
 0x9a4   :  { %1866 = dma.vmem_to_hbm [thread:$0]  %s1861_s13, 256, %s2500_s3, [#allocation4], %s2246_s17, %s2246_s17, %s2247_s18  }
 0x9a5   :  { %2242 = dma.done.wait [#allocation4], 256  }
 0x9a6   :  { %2243 = vsyncadd [#allocation4], 4294967040 }
 0x9a7   :  { %1870 = vsyncpa [#allocation3], 1 }
 0x9a8   :  { %1871 = vsyncpa [#allocation6], 1 }
 0x9a9   :  { %1872 = vsyncpa [#allocation4], 1 }

</bundles_post_ra>
